<compile_context>
chip_gen: v5e
topology: v5e:2x2
jax: 0.10.0
libtpu: 0.0.40
codegen_flags: <defaults>
</compile_context>

<pallas_src>
import functools
import math

import jax
import jax.numpy as jnp
from jax import lax
from jax.experimental import pallas as pl
from jax.experimental.pallas import tpu as pltpu

_EPS = 1e-12  # F.normalize default eps


def _norm_linear_kernel(x_ref, w_ref, s_ref, o_ref, *, matmul_dtype):
    x = x_ref[...]
    w = w_ref[...]
    if matmul_dtype is not None:
        if x.dtype != matmul_dtype:
            x = x.astype(matmul_dtype)
        if w.dtype != matmul_dtype:     # usually a no-op: weight pre-cast in wrapper
            w = w.astype(matmul_dtype)

    acc = jnp.dot(x, w, preferred_element_type=jnp.float32)   # (tm, tn) f32, MXU

    # Fold the column normalization into an output rescale:
    #   x @ (w / ||w||) == (x @ w) * (1 / ||w||)
    o_ref[...] = (acc * s_ref[...]).astype(o_ref.dtype)


def _round_up(a, b):
    return ((a + b - 1) // b) * b


def norm_linear(x, weight, *, tm=256, tn=512, matmul_dtype=None,
                vmem_limit_bytes=None, stream_buffer_count=None):
    """x: (..., in_dim), weight: (in_dim, out_dim) -> (..., out_dim)."""
    in_dim, out_dim = weight.shape
    assert x.shape[-1] == in_dim
    lead = x.shape[:-1]
    x2d = x.reshape(-1, in_dim)
    M = x2d.shape[0]

    # Hoisted column L2 norm (always from full-precision weights).
    # Clamping the sum-of-squares at eps**2 == PyTorch's clamp_min(eps) on the norm.
    w32 = weight.astype(jnp.float32)
    inv_norm = lax.rsqrt(
        jnp.maximum(jnp.sum(w32 * w32, axis=0, keepdims=True), _EPS * _EPS)
    )                                                           # (1, out_dim) f32

    w = weight
    if matmul_dtype is not None and w.dtype != jnp.dtype(matmul_dtype):
        w = w.astype(matmul_dtype)   # cast once; streamed operand bytes halve for bf16

    x_item = jnp.dtype(x2d.dtype).itemsize
    w_item = jnp.dtype(w.dtype).itemsize
    out_item = jnp.dtype(x.dtype).itemsize

    # ---- tile selection (no wrapper-side padding; edge blocks via cdiv grid) ----
    sub = 16 if x_item == 2 else 8
    tm_eff = max(sub, min(_round_up(tm, sub), _round_up(M, sub)))

    full_w_bytes = in_dim * out_dim * w_item
    if out_dim < 128 or out_dim <= tn or full_w_bytes <= 12 * 1024 * 1024:
        # Full-dim lane tile: weight block index never changes -> fetched once.
        tn_eff = out_dim
    else:
        tn_eff = max(128, (min(tn, out_dim) // 128) * 128)      # lane-dense tile

    gm = pl.cdiv(M, tm_eff)
    gn = pl.cdiv(out_dim, tn_eff)

    # ---- residency: keep the larger-footprint operand resident on the inner axis ----
    x_bytes = M * in_dim * x_item
    w_bytes = in_dim * out_dim * w_item
    bytes_rows_outer = x_bytes + gm * w_bytes    # x resident, weight streamed
    bytes_cols_outer = gn * x_bytes + w_bytes    # weight resident, x streamed
    rows_outer = bytes_rows_outer <= bytes_cols_outer

    if rows_outer:
        grid = (gm, gn)
        x_map = lambda i, j: (i, 0)
        w_map = lambda i, j: (0, j)
        s_map = lambda i, j: (0, j)
        o_map = lambda i, j: (i, j)
        hbm_in_bytes = bytes_rows_outer
    else:
        grid = (gn, gm)
        x_map = lambda j, i: (i, 0)
        w_map = lambda j, i: (0, j)
        s_map = lambda j, i: (0, j)
        o_map = lambda j, i: (i, j)
        hbm_in_bytes = bytes_cols_outer

    x_spec = pl.BlockSpec((tm_eff, in_dim), x_map)
    w_spec = pl.BlockSpec((in_dim, tn_eff), w_map)
    if stream_buffer_count is not None:
        # Only worth extra VMEM when the pipeline is DMA-exposed (small in_dim).
        buf = pl.Buffered(stream_buffer_count)
        if rows_outer and gn > 1:
            w_spec = pl.BlockSpec((in_dim, tn_eff), w_map, pipeline_mode=buf)
        elif (not rows_outer) and gm > 1:
            x_spec = pl.BlockSpec((tm_eff, in_dim), x_map, pipeline_mode=buf)
    s_spec = pl.BlockSpec((1, tn_eff), s_map)
    o_spec = pl.BlockSpec((tm_eff, tn_eff), o_map)

    # ---- VMEM limit derived from the double-buffered working set (v7x: 64 MiB phys) ----
    if vmem_limit_bytes is None:
        per_step = (tm_eff * in_dim * x_item
                    + in_dim * tn_eff * w_item
                    + tm_eff * tn_eff * out_item
                    + tn_eff * 4)
        vmem_limit_bytes = int(min(48 * 1024 * 1024,
                                   max(16 * 1024 * 1024,
                                       2 * per_step + 4 * 1024 * 1024)))

    cost = pl.CostEstimate(
        flops=int(2 * (gm * tm_eff) * in_dim * (gn * tn_eff)),
        transcendentals=0,   # rsqrt is hoisted to the wrapper
        bytes_accessed=int(hbm_in_bytes + M * out_dim * out_item + out_dim * 4),
    )

    kernel = functools.partial(_norm_linear_kernel, matmul_dtype=matmul_dtype)

    out = pl.pallas_call(
        kernel,
        out_shape=jax.ShapeDtypeStruct((M, out_dim), x.dtype),
        grid_spec=pltpu.PrefetchScalarGridSpec(
            num_scalar_prefetch=0,
            grid=grid,
            in_specs=[x_spec, w_spec, s_spec],
            out_specs=o_spec,
        ),
        compiler_params=pltpu.CompilerParams(
            dimension_semantics=("parallel", "parallel"),
            vmem_limit_bytes=vmem_limit_bytes,
        ),
        cost_estimate=cost,
    )(x2d, w, inv_norm)

    return out.reshape(*lead, out_dim)


def xavier_uniform_relu(key, in_dim, out_dim, dtype=jnp.float32):
    # nn.init.xavier_uniform_(w, gain=calculate_gain('relu')):
    #   gain = sqrt(2); bound = gain * sqrt(6 / (fan_in + fan_out))
    gain = math.sqrt(2.0)
    bound = gain * math.sqrt(6.0 / (in_dim + out_dim))
    return jax.random.uniform(key, (in_dim, out_dim), dtype=dtype,
                              minval=-bound, maxval=bound)


def _reference(x, weight):
    w_n = weight / jnp.maximum(
        jnp.linalg.norm(weight, axis=0, keepdims=True), _EPS)
    return jnp.einsum("...d,de->...e", x, w_n,
                      precision=jax.lax.Precision.HIGHEST)


if __name__ == "__main__":
    key = jax.random.PRNGKey(0)
    kx, kw, kx2, kw2 = jax.random.split(key, 4)

    # Main check (shapes consistent with the module's usage): x (batch, seq, in_dim)
    batch, seq, in_dim, out_dim = 2, 8, 32, 128
    x = jax.random.normal(kx, (batch, seq, in_dim), dtype=jnp.float32)
    weight = xavier_uniform_relu(kw, in_dim, out_dim)

    y = norm_linear(x, weight)
    jax.block_until_ready(y)
    y_ref = _reference(x, weight)
    assert y.shape == (batch, seq, out_dim)
    assert jnp.allclose(y, y_ref, atol=2e-5, rtol=1e-5)

    # Edge-block path: M = 15 rows (not a tile multiple, no wrapper-side pad),
    # out_dim = 64 (< 128 -> full-dim lane tile, masked partial stores).
    x2 = jax.random.normal(kx2, (3, 5, in_dim), dtype=jnp.float32)
    weight2 = xavier_uniform_relu(kw2, in_dim, 64)
    y2 = norm_linear(x2, weight2)
    jax.block_until_ready(y2)
    y2_ref = _reference(x2, weight2)
    assert y2.shape == (3, 5, 64)
    assert jnp.allclose(y2, y2_ref, atol=2e-5, rtol=1e-5)

    # bf16 matmul operands (weight pre-cast once in the wrapper); accumulation
    # and inv_norm stay f32, so only operand rounding differs from the reference.
    y3 = norm_linear(x, weight, matmul_dtype=jnp.bfloat16)
    jax.block_until_ready(y3)
    assert y3.shape == (batch, seq, out_dim)
    assert jnp.allclose(y3, y_ref, atol=5e-2, rtol=5e-2)

    print("KERNEL_OK")
</pallas_src>

<mosaic_0001>
module attributes {stable_mosaic.version = 11 : i64} {
  func.func @_norm_linear_kernel(%arg0: i32, %arg1: i32, %arg2: memref<16x32xf32, #tpu.memory_space<vmem>>, %arg3: memref<32x128xf32, #tpu.memory_space<vmem>>, %arg4: memref<1x128xf32, #tpu.memory_space<vmem>>, %arg5: memref<16x128xf32, #tpu.memory_space<vmem>>) attributes {dimension_semantics = [#tpu.dimension_semantics<parallel>, #tpu.dimension_semantics<parallel>], iteration_bounds = array<i64: 1, 1>, scalar_prefetch = 0 : i64, scratch_operands = 0 : i64, tpu.core_type = #tpu.core_type<tc>, window_params = [{transform_indices = @transform_0, window_bounds = array<i64: 16, 32>}, {transform_indices = @transform_1, window_bounds = array<i64: 32, 128>}, {transform_indices = @transform_2, window_bounds = array<i64: 1, 128>}, {transform_indices = @transform_3, window_bounds = array<i64: 16, 128>}]} {
    %c0 = arith.constant 0 : index
    %c0_0 = arith.constant 0 : index
    %0 = vector.load %arg2[%c0, %c0_0] : memref<16x32xf32, #tpu.memory_space<vmem>>, vector<16x32xf32>
    %c0_1 = arith.constant 0 : index
    %c0_2 = arith.constant 0 : index
    %1 = vector.load %arg3[%c0_1, %c0_2] : memref<32x128xf32, #tpu.memory_space<vmem>>, vector<32x128xf32>
    %cst = arith.constant dense<0.000000e+00> : vector<16x128xf32>
    %2 = tpu.matmul %0, %1, %cst {dimension_numbers = #tpu.dot_dimension_numbers<[1], [0], [0], [1], [0, 0, 1, 1], [], []>} : vector<16x32xf32>, vector<32x128xf32>, vector<16x128xf32> -> vector<16x128xf32>
    %c0_3 = arith.constant 0 : index
    %c0_4 = arith.constant 0 : index
    %3 = vector.load %arg4[%c0_3, %c0_4] : memref<1x128xf32, #tpu.memory_space<vmem>>, vector<1x128xf32>
    %4 = vector.broadcast %3 : vector<1x128xf32> to vector<16x128xf32>
    %5 = arith.mulf %2, %4 : vector<16x128xf32>
    %c0_5 = arith.constant 0 : index
    %c0_6 = arith.constant 0 : index
    %6 = vector.load %arg5[%c0_5, %c0_6] : memref<16x128xf32, #tpu.memory_space<vmem>>, vector<16x128xf32>
    tpu.vector_store %arg5[%c0_5, %c0_6], %5 {strides = array<i32>} : memref<16x128xf32, #tpu.memory_space<vmem>>, vector<16x128xf32>,
    return
  }
  func.func @transform_0(%arg0: i32, %arg1: i32) -> (i32, i32) {
    %c0_i32 = arith.constant 0 : i32
    %c0_i32_0 = arith.constant 0 : i32
    return %arg0, %c0_i32 : i32, i32
  }
  func.func @transform_1(%arg0: i32, %arg1: i32) -> (i32, i32) {
    %c0_i32 = arith.constant 0 : i32
    %c0_i32_0 = arith.constant 0 : i32
    return %c0_i32, %arg1 : i32, i32
  }
  func.func @transform_2(%arg0: i32, %arg1: i32) -> (i32, i32) {
    %c0_i32 = arith.constant 0 : i32
    %c0_i32_0 = arith.constant 0 : i32
    return %c0_i32, %arg1 : i32, i32
  }
  func.func @transform_3(%arg0: i32, %arg1: i32) -> (i32, i32) {
    %c0_i32 = arith.constant 0 : i32
    return %arg0, %arg1 : i32, i32
  }
}

</mosaic_0001>

<bundles_post_ra>
// kernel: tpu_custom_call.1
= control target key start
LH: loop header
LB: loop body
LE: loop exit
PB: predicated region body
PF: predicated region fallthrough
CT: control target
= control target key end

     0   :  { %8 = vsyncpa [#allocation3], 0  ;;  %s247_s0 = inlined_call_operand.hbm [shape: f32[16,32], index: 0, kind: input, shape index: {}]   ;;  %s248_s1 = inlined_call_operand.hbm [shape: f32[32,128], index: 1, kind: input, shape index: {}]   ;;  %s249_s2 = inlined_call_operand.vmem [shape: f32[1,128], index: 2, kind: input, shape index: {}]   ;;  %s250_s3 = inlined_call_operand.hbm [shape: f32[16,128], index: 3, kind: output, shape index: {}]  }
   0x1   :  { %9 = vsyncpa [#allocation6], 0 }
   0x2   :  { %10 = vsyncpa [#allocation4], 0  ;;  %s15_s14 = sshll.u32 %s247_s0, 4  ;;  %s201_s15 = smov [#allocation2]   ;;  %s16_s14 = int_to_ptr.hbm [resolvable:$true] %s15_s14 }
   0x3   :  { %s17_s16 = sshll.u32 %s201_s15, 4  ;;  %s28_s19 = sshll.u32 %s248_s1, 4  ;;  %s18_s16 = int_to_ptr.vmem [resolvable:$true] %s17_s16  ;;  %s29_s19 = int_to_ptr.hbm [resolvable:$true] %s28_s19 }
   0x4   :  { %s202_s20 = smov 128   ;;  %s203_s21 = smov 8  }
   0x5   :  { %23 = dma.hbm_to_vmem [thread:$0]  %s16_s14, 256, %s18_s16, [#allocation3], %s202_s20, %s202_s20, %s203_s21  }
   0x6   :  { %s204_s22 = smov [#allocation5]  }
   0x7   :  { %s30_s23 = sshll.u32 %s204_s22, 4  ;;  %s31_s23 = int_to_ptr.vmem [resolvable:$true] %s30_s23 }
   0x8   :  { %36 = dma.hbm_to_vmem [thread:$0]  %s29_s19, 512, %s31_s23, [#allocation6], %s202_s20, %s202_s20, %s203_s21  }
   0x9   :  { %195 = dma.done.wait [#allocation3], 256  }
   0xa   :  { %196 = vsyncadd [#allocation3], 4294967040 }
   0xb   :  { %197 = dma.done.wait [#allocation6], 512  }
   0xc   :  { %198 = vsyncadd [#allocation6], 4294966784  ;;  %v52_v0 = vld [vmem:[#allocation5 + $0x18] sm:$0xff]  ;;  %v51_v1 = vld [vmem:[#allocation5 + $0x10] sm:$0xff]  ;;  %vm53_vm0 = vcmask 261120   ;;  %s205_s24 = smov [#allocation7]  }
   0xd   :  { %72 = vmatpush.msra.mxu0 %v52_v0  ;;  %113 = vmatpush.msra.mxu1 %v52_v0  ;;  %v50_v2 = vld [vmem:[#allocation5 + $0x8] sm:$0xff]  ;;  %v49_v3 = vld [vmem:[#allocation5] sm:$0xff]  ;;  %v47_v4 = vld [vmem:[#allocation2] sm:$0xff]  ;;  %s95_s25 = sshll.u32 %s205_s24, 4  ;;  %s97_s28 = sshll.u32 %s250_s3, 4  ;;  %s96_s25 = int_to_ptr.vmem [resolvable:$true] %s95_s25  ;;  %s98_s28 = int_to_ptr.hbm [resolvable:$true] %s97_s28 }
   0xe   :  { %v48_v5 = vld [vmem:[#allocation2 + $0x8] sm:$0xff]  ;;  %v122_v6 = vld [vmem:[%s249_s2] ss:$0 sm:$0xff] }
   0xf   :  { %73 = vmatpush.msra.mxu0 %v51_v1  ;;  %114 = vmatpush.msra.mxu1 %v51_v1 }
  0x11   :  { %74 = vmatpush.msra.mxu0 %v50_v2  ;;  %115 = vmatpush.msra.mxu1 %v50_v2 }
  0x13   :  { %75 = vmatpush.msra.mxu0 %v49_v3  ;;  %116 = vmatpush.msra.mxu1 %v49_v3 }
  0x14   :  { %111 = vmatmul.msk.f32.vlgmr.msra.gmra.mxu0 %vm53_vm0, %v47_v4  ;;  %112 = vmatmul.msk.f32.vlgmr.msra.gmra.mxu1 %vm53_vm0, %v48_v5 }
  0x91   :  { %v77_v7 = vpop.f32.mrf.mxu0  ;;  %v80_v8 = vpop.f32.mrf.mxu1 }
  0x92   :  { %v87_v9 = vmul.f32 %v122_v6, %v77_v7  ;;  %v88_v10 = vmul.f32 %v122_v6, %v80_v8 }
  0x94   :  { %89 = vst [vmem:[#allocation7] sm:$0xff] %v87_v9 }
  0x95   :  { %90 = vst [vmem:[#allocation7 + $0x8] sm:$0xff] %v88_v10 }
  0x96   :  { %103 = dma.vmem_to_hbm [thread:$0]  %s96_s25, 256, %s98_s28, [#allocation4], %s202_s20, %s202_s20, %s203_s21  }
  0x97   :  { %199 = dma.done.wait [#allocation4], 256  }
  0x98   :  { %200 = vsyncadd [#allocation4], 4294967040 }
  0x99   :  { %108 = vsyncpa [#allocation3], 1 }
  0x9a   :  { %109 = vsyncpa [#allocation6], 1 }
  0x9b   :  { %110 = vsyncpa [#allocation4], 1 }

</bundles_post_ra>
